<compile_context>
chip_gen: v6e
topology: v6e:2x2x1
jax: 0.10.0
libtpu: 0.0.40
codegen_flags: <defaults>
</compile_context>

<pallas_src>
import jax
import jax.numpy as jnp
from jax.experimental import pallas as pl
from jax.experimental.pallas import tpu as pltpu

HIDDEN = 300        # nn.Linear(indim, 300)
HIDDEN_PAD = 384    # padded to a multiple of 128 lanes (3 lane tiles)
OUTDIM = 1          # nn.Linear(300, 1)
LANES = 128
VMEM_BUDGET = 48 * 1024 * 1024   # headroom inside v7x's 64 MiB-per-TC VMEM


def _round_up(x, m):
    return (x + m - 1) // m * m


def _vmem_estimate_bytes(tile_n, indim, x_itemsize):
    """Conservative per-TC VMEM budget for one pallas_call step."""
    x_in = 2 * tile_n * indim * x_itemsize        # double-buffered streamed x tile
    x_bf16 = tile_n * indim * 2                   # in-kernel bf16 cast of the tile
    w1 = 2 * indim * HIDDEN_PAD * 2               # resident bf16 w1 (worst case 2 bufs)
    vecs = 2 * 3 * HIDDEN_PAD * 4                 # b1, w2, b2 (+ double-buffer slack)
    h = 2 * tile_n * HIDDEN_PAD * 4               # f32 h + fused product intermediate
    out = 2 * tile_n * 4                          # double-buffered lane-dense out tile
    return x_in + x_bf16 + w1 + vecs + h + out + (2 << 20)  # + Mosaic scratch headroom


def mlp_kernel(x_ref, w1_ref, b1_ref, w2_ref, b2_ref, o_ref):
    rows, lanes = o_ref.shape                     # (tile_n // 128, 128)

    # layer1: per-tile f32->bf16 cast (VPU, hidden under DMA), bf16 MXU matmul with
    # f32 accumulation; bias + ReLU in f32 on the VPU.
    x_bf16 = x_ref[...].astype(jnp.bfloat16)
    h = jnp.dot(x_bf16, w1_ref[...], preferred_element_type=jnp.float32)
    h = jnp.maximum(h + b1_ref[...], 0.0)

    # TODO(synk): nn.Dropout is an identity at inference; training-mode dropout would
    # use pltpu.prng_seed / pltpu.stateful_bernoulli.

    # layer2 (out_features == 1): VPU multiply + XLU lane reduce.  Batch rows are
    # re-tiled onto (sublane, lane) first so the reduce output, bias-add, sigmoid and
    # store are all lane-dense (unmasked vst on full 128-lane vregs).
    # The pad columns (300..383) of w1/b1/w2 are exactly zero, so they contribute 0.
    h3 = h.reshape(rows, lanes, HIDDEN_PAD)
    out = jnp.sum(h3 * w2_ref[...].reshape(1, 1, HIDDEN_PAD), axis=-1)  # (rows, 128)
    out = out + b2_ref[...]                       # (1,1) broadcast

    # sigmoid (EUP exp) in f32.
    o_ref[...] = jax.nn.sigmoid(out).astype(o_ref.dtype)


def mlp_forward(x, w1, b1, w2, b2, *, tile_n=1024):
    """x: [N, indim] (f32 or bf16). w1: [indim, 300], b1: [300], w2: [300, 1], b2: [1].

    Returns sigmoid(relu(x @ w1 + b1) @ w2 + b2) as [N, 1] float32.
    """
    n, indim = x.shape
    assert w1.shape == (indim, HIDDEN)

    # ---- one-time parameter prep (tiny vs. streaming x; hoist/jit with constant
    # weights in a real pipeline to avoid repeating it per call) --------------------
    w1_p = jnp.zeros((indim, HIDDEN_PAD), jnp.bfloat16)
    w1_p = w1_p.at[:, :HIDDEN].set(w1.astype(jnp.bfloat16))
    b1_p = jnp.zeros((1, HIDDEN_PAD), jnp.float32)
    b1_p = b1_p.at[:, :HIDDEN].set(b1.reshape(-1).astype(jnp.float32))
    w2_p = jnp.zeros((1, HIDDEN_PAD), jnp.float32)
    w2_p = w2_p.at[:, :HIDDEN].set(w2.reshape(-1).astype(jnp.float32))
    b2_p = b2.reshape(1, 1).astype(jnp.float32)

    # ---- batch tiling --------------------------------------------------------------
    # Keep tile_n a multiple of 128 so the lane-dense (tile_n//128, 128) output block
    # is legal; shrink against the explicit VMEM budget (v7x: 64 MiB per TC), then
    # re-balance the tile size across tiles so a partial last tile wastes little work.
    x_itemsize = jnp.dtype(x.dtype).itemsize
    tile_n = max(LANES, _round_up(min(tile_n, _round_up(n, LANES)), LANES))
    while tile_n > LANES and _vmem_estimate_bytes(tile_n, indim, x_itemsize) > VMEM_BUDGET:
        tile_n = max(LANES, _round_up(tile_n // 2, LANES))
    num_tiles = pl.cdiv(n, tile_n)
    tile_n = _round_up(pl.cdiv(n, num_tiles), LANES)
    rows_per_tile = tile_n // LANES

    vmem_limit = int(min(max(_vmem_estimate_bytes(tile_n, indim, x_itemsize), 32 << 20),
                         100 << 20))

    out3 = pl.pallas_call(
        mlp_kernel,
        out_shape=jax.ShapeDtypeStruct((num_tiles, rows_per_tile, LANES), jnp.float32),
        grid_spec=pltpu.PrefetchScalarGridSpec(
            num_scalar_prefetch=0,
            grid=(num_tiles,),
            in_specs=[
                # streamed + double-buffered x tiles (boundary block handled by Pallas)
                pl.BlockSpec((tile_n, indim), lambda i: (i, 0)),
                # weights / biases: constant index_map -> resident in VMEM
                pl.BlockSpec((indim, HIDDEN_PAD), lambda i: (0, 0)),
                pl.BlockSpec((1, HIDDEN_PAD), lambda i: (0, 0)),
                pl.BlockSpec((1, HIDDEN_PAD), lambda i: (0, 0)),
                pl.BlockSpec((1, OUTDIM), lambda i: (0, 0)),
            ],
            # lane-dense output tile; leading grid dim squeezed out of the kernel ref
            out_specs=pl.BlockSpec((None, rows_per_tile, LANES), lambda i: (i, 0, 0)),
        ),
        compiler_params=pltpu.CompilerParams(
            # batch tiles are independent -> shard across both TCs on v7x
            dimension_semantics=("parallel",),
            vmem_limit_bytes=vmem_limit,
        ),
    )(x, w1_p, b1_p, w2_p, b2_p)

    # flatten lane-dense tiles back to batch order; drop tail-tile garbage rows.
    return out3.reshape(-1)[:n].reshape(n, OUTDIM)


def reference_forward_f32(x, w1, b1, w2, b2):
    h = jnp.maximum(x @ w1 + b1, 0.0)
    return jax.nn.sigmoid(h @ w2 + b2)


def reference_forward_bf16(x, w1, b1, w2, b2):
    # mirrors the kernel's precision: bf16 matmul inputs, f32 accumulate/elementwise
    h = jnp.dot(x.astype(jnp.bfloat16), w1.astype(jnp.bfloat16),
                preferred_element_type=jnp.float32) + b1
    h = jnp.maximum(h, 0.0)
    return jax.nn.sigmoid(h @ w2 + b2)


if __name__ == "__main__":
    key = jax.random.PRNGKey(0)
    k_x, k_w1, k_b1, k_w2, k_b2 = jax.random.split(key, 5)

    N, INDIM = 8, 32  # small example consistent with the module's forward

    x = jax.random.normal(k_x, (N, INDIM), dtype=jnp.float32)
    # nn.Linear weights stored pre-transposed: [in_features, out_features]
    w1 = jax.random.normal(k_w1, (INDIM, HIDDEN), dtype=jnp.float32) * 0.1
    b1 = jax.random.normal(k_b1, (HIDDEN,), dtype=jnp.float32) * 0.1
    w2 = jax.random.normal(k_w2, (HIDDEN, OUTDIM), dtype=jnp.float32) * 0.1
    b2 = jax.random.normal(k_b2, (OUTDIM,), dtype=jnp.float32) * 0.1

    out = mlp_forward(x, w1, b1, w2, b2)
    out = jax.block_until_ready(out)

    assert out.shape == (N, OUTDIM), out.shape

    ref_bf16 = reference_forward_bf16(x, w1, b1, w2, b2)
    ref_f32 = reference_forward_f32(x, w1, b1, w2, b2)
    err_bf16 = jnp.max(jnp.abs(out - ref_bf16))
    err_f32 = jnp.max(jnp.abs(out - ref_f32))
    assert jnp.allclose(out, ref_bf16, atol=2e-3, rtol=0), f"max abs err vs bf16 ref {err_bf16}"
    assert jnp.allclose(out, ref_f32, atol=2e-2, rtol=0), f"max abs err vs f32 ref {err_f32}"

    print("KERNEL_OK")
</pallas_src>

<mosaic_0001>
module attributes {stable_mosaic.version = 11 : i64} {
  func.func @mlp_kernel(%arg0: i32, %arg1: memref<128x32xf32, #tpu.memory_space<vmem>>, %arg2: memref<32x384xbf16, #tpu.memory_space<vmem>>, %arg3: memref<1x384xf32, #tpu.memory_space<vmem>>, %arg4: memref<1x384xf32, #tpu.memory_space<vmem>>, %arg5: memref<1x1xf32, #tpu.memory_space<vmem>>, %arg6: memref<1x1x128xf32, #tpu.memory_space<vmem>>) attributes {dimension_semantics = [#tpu.dimension_semantics<parallel>], iteration_bounds = array<i64: 1>, scalar_prefetch = 0 : i64, scratch_operands = 0 : i64, tpu.core_type = #tpu.core_type<tc>, window_params = [{transform_indices = @transform_0, window_bounds = array<i64: 128, 32>}, {pipeline_mode = #tpu.pipeline_mode<synchronous>, transform_indices = @transform_1, window_bounds = array<i64: 32, 384>}, {pipeline_mode = #tpu.pipeline_mode<synchronous>, transform_indices = @transform_2, window_bounds = array<i64: 1, 384>}, {pipeline_mode = #tpu.pipeline_mode<synchronous>, transform_indices = @transform_3, window_bounds = array<i64: 1, 384>}, {pipeline_mode = #tpu.pipeline_mode<synchronous>, transform_indices = @transform_4, window_bounds = array<i64: 1, 1>}, {transform_indices = @transform_5, window_bounds = array<i64: 1, 1, 128>}]} {
    %c0 = arith.constant 0 : index
    %c0_0 = arith.constant 0 : index
    %0 = vector.load %arg1[%c0, %c0_0] : memref<128x32xf32, #tpu.memory_space<vmem>>, vector<128x32xf32>
    %1 = arith.truncf %0 : vector<128x32xf32> to vector<128x32xbf16>
    %c0_1 = arith.constant 0 : index
    %c0_2 = arith.constant 0 : index
    %2 = vector.load %arg2[%c0_1, %c0_2] : memref<32x384xbf16, #tpu.memory_space<vmem>>, vector<32x384xbf16>
    %cst = arith.constant dense<0.000000e+00> : vector<128x384xf32>
    %3 = tpu.matmul %1, %2, %cst {dimension_numbers = #tpu.dot_dimension_numbers<[1], [0], [0], [1], [0, 0, 1, 1], [], []>} : vector<128x32xbf16>, vector<32x384xbf16>, vector<128x384xf32> -> vector<128x384xf32>
    %c0_3 = arith.constant 0 : index
    %c0_4 = arith.constant 0 : index
    %4 = vector.load %arg3[%c0_3, %c0_4] : memref<1x384xf32, #tpu.memory_space<vmem>>, vector<1x384xf32>
    %5 = vector.broadcast %4 : vector<1x384xf32> to vector<128x384xf32>
    %6 = arith.addf %3, %5 : vector<128x384xf32>
    %cst_5 = arith.constant 0.000000e+00 : f32
    %7 = vector.broadcast %cst_5 : f32 to vector<128x384xf32>
    %8 = arith.maximumf %6, %7 : vector<128x384xf32>
    %9 = vector.shape_cast %8 : vector<128x384xf32> to vector<1x128x384xf32>
    %c0_6 = arith.constant 0 : index
    %c0_7 = arith.constant 0 : index
    %10 = vector.load %arg4[%c0_6, %c0_7] : memref<1x384xf32, #tpu.memory_space<vmem>>, vector<1x384xf32>
    %11 = vector.shape_cast %10 : vector<1x384xf32> to vector<1x1x384xf32>
    %12 = vector.broadcast %11 : vector<1x1x384xf32> to vector<1x128x384xf32>
    %13 = arith.mulf %9, %12 : vector<1x128x384xf32>
    %cst_8 = arith.constant dense<0.000000e+00> : vector<1x128xf32>
    %14 = vector.multi_reduction <add>, %13, %cst_8 [2] : vector<1x128x384xf32> to vector<1x128xf32>
    %c0_9 = arith.constant 0 : index
    %c0_10 = arith.constant 0 : index
    %15 = vector.load %arg5[%c0_9, %c0_10] : memref<1x1xf32, #tpu.memory_space<vmem>>, vector<1x1xf32>
    %16 = vector.broadcast %15 : vector<1x1xf32> to vector<1x128xf32>
    %17 = arith.addf %14, %16 : vector<1x128xf32>
    %18 = arith.negf %17 : vector<1x128xf32>
    %19 = math.exp %18 : vector<1x128xf32>
    %cst_11 = arith.constant 1.000000e+00 : f32
    %20 = vector.broadcast %cst_11 : f32 to vector<1x128xf32>
    %21 = arith.addf %20, %19 : vector<1x128xf32>
    %22 = arith.divf %20, %21 : vector<1x128xf32>
    %c0_12 = arith.constant 0 : index
    %c0_13 = arith.constant 0 : index
    %c0_14 = arith.constant 0 : index
    %23 = vector.load %arg6[%c0_12, %c0_13, %c0_14] : memref<1x1x128xf32, #tpu.memory_space<vmem>>, vector<1x1x128xf32>
    %24 = vector.shape_cast %23 : vector<1x1x128xf32> to vector<1x128xf32>
    %25 = vector.shape_cast %22 : vector<1x128xf32> to vector<1x1x128xf32>
    tpu.vector_store %arg6[%c0_12, %c0_13, %c0_14], %25 {strides = array<i32>} : memref<1x1x128xf32, #tpu.memory_space<vmem>>, vector<1x1x128xf32>,
    return
  }
  func.func @transform_0(%arg0: i32) -> (i32, i32) {
    %c0_i32 = arith.constant 0 : i32
    %c0_i32_0 = arith.constant 0 : i32
    return %arg0, %c0_i32 : i32, i32
  }
  func.func @transform_1(%arg0: i32) -> (i32, i32) {
    %c0_i32 = arith.constant 0 : i32
    %c0_i32_0 = arith.constant 0 : i32
    %c0_i32_1 = arith.constant 0 : i32
    return %c0_i32, %c0_i32_0 : i32, i32
  }
  func.func @transform_2(%arg0: i32) -> (i32, i32) {
    %c0_i32 = arith.constant 0 : i32
    %c0_i32_0 = arith.constant 0 : i32
    %c0_i32_1 = arith.constant 0 : i32
    return %c0_i32, %c0_i32_0 : i32, i32
  }
  func.func @transform_3(%arg0: i32) -> (i32, i32) {
    %c0_i32 = arith.constant 0 : i32
    %c0_i32_0 = arith.constant 0 : i32
    %c0_i32_1 = arith.constant 0 : i32
    return %c0_i32, %c0_i32_0 : i32, i32
  }
  func.func @transform_4(%arg0: i32) -> (i32, i32) {
    %c0_i32 = arith.constant 0 : i32
    %c0_i32_0 = arith.constant 0 : i32
    %c0_i32_1 = arith.constant 0 : i32
    return %c0_i32, %c0_i32_0 : i32, i32
  }
  func.func @transform_5(%arg0: i32) -> (i32, i32, i32) {
    %c0_i32 = arith.constant 0 : i32
    %c0_i32_0 = arith.constant 0 : i32
    %c0_i32_1 = arith.constant 0 : i32
    return %arg0, %c0_i32, %c0_i32_0 : i32, i32, i32
  }
}

</mosaic_0001>

<bundles_post_ra>
// kernel: tpu_custom_call.1
= control target key start
LH: loop header
LB: loop body
LE: loop exit
PB: predicated region body
PF: predicated region fallthrough
CT: control target
= control target key end

     0   :  { %s1310_s0 = inlined_call_operand.hbm [shape: f32[8,32], index: 0, kind: input, shape index: {}]   ;;  %s1311_s1 = inlined_call_operand.hbm [shape: bf16[32,384], index: 1, kind: input, shape index: {}]   ;;  %s1312_s2 = inlined_call_operand.vmem [shape: f32[1,384], index: 2, kind: input, shape index: {}]   ;;  %s1313_s3 = inlined_call_operand.vmem [shape: f32[1,384], index: 3, kind: input, shape index: {}]   ;;  %s1314_s4 = inlined_call_operand.<no memory space> [shape: f32[1,1], index: 4, kind: input, shape index: {}]   ;;  %s1315_s5 = inlined_call_operand.hbm [shape: f32[1,1,128], index: 5, kind: output, shape index: {}]  }
   0x1   :  { %v10_v0 = vstv %s1314_s4 }
   0x2   :  { %11 = vst [vmem:[#allocation2] sm:$0x1] %v10_v0 }
   0x3   :  { %12 = vsyncpa [#allocation4], 0 }
   0x4   :  { %13 = vsyncpa [#allocation7], 0 }
   0x5   :  { %14 = vsyncpa [#allocation5], 0 }
   0x6   :  { %19 = vsyncadd [#allocation4], 1920  ;;  %s1032_s20 = smov [#allocation3]  }
   0x7   :  { %s20_s21 = sshll.u32 %s1032_s20, 4  ;;  %s21_s21 = int_to_ptr.vmem [resolvable:$true] %s20_s21 }
   0x8   :  { %s974_s22 = scalar_lea.vmem %s21_s21, 128  ;;  %s978_s23 = scalar_lea.vmem %s21_s21, 2048 }
   0x9   :  { %p975_p0 = scmp.ne.s32.totalorder %s21_s21, %s974_s22  ;;  %p979_p1 = scmp.lt.s32.totalorder %s21_s21, %s21_s21 }
   0xa   :  { %p980_p2 = scmp.lt.s32.totalorder %s978_s23, %s974_s22 }
   0xc   :  { %p981_p3 = por %p980_p2, %p979_p1 }
   0xe   :  { %p982_p4 = pnand %p981_p3, %p975_p0 }
  0x10   :  { %985 = shalt.err (!%p982_p4)
}
  0x11   :  { %s1033_s24 = smov 128   ;;  %s1034_s25 = smov 8  }
  0x12   :  { %26 = dma.hbm_to_vmem [thread:$0]  %s1310_s0, 128, %s21_s21, [#allocation4], %s1033_s24, %s1033_s24, %s1034_s25  }
  0x13   :  { %s1035_s27 = smov [#allocation6]  }
  0x14   :  { %s32_s28 = sshll.u32 %s1035_s27, 4  ;;  %s33_s28 = int_to_ptr.vmem [resolvable:$true] %s32_s28 }
  0x15   :  { %s994_s29 = scalar_lea.vmem %s33_s28, 768  ;;  %p999_p6 = scmp.lt.s32.totalorder %s33_s28, %s33_s28 }
  0x16   :  { %p995_p5 = scmp.ne.s32.totalorder %s33_s28, %s994_s29  ;;  %p1000_p7 = scmp.lt.s32.totalorder %s994_s29, %s994_s29 }
  0x18   :  { %p1001_p8 = por %p1000_p7, %p999_p6 }
  0x1a   :  { %p1002_p9 = pnand %p1001_p8, %p995_p5 }
  0x1c   :  { %1005 = shalt.err (!%p1002_p9)
}
  0x1d   :  { %s1036_s30 = smov 192   ;;  %s1037_s6 = smov 12  }
  0x1e   :  { %38 = dma.hbm_to_vmem [thread:$0]  %s1311_s1, 768, %s33_s28, [#allocation7], %s1036_s30, %s1036_s30, %s1037_s6  }
  0x1f   :  { %1026 = dma.done.wait [#allocation4], 2048  }
  0x20   :  { %1027 = vsyncadd [#allocation4], 4294965248 }
  0x21   :  { %1028 = dma.done.wait [#allocation7], 768  }
  0x22   :  { %1029 = vsyncadd [#allocation7], 4294966528  ;;  %v1038_v1 = vmov 0   ;;  %v894_v2 = vld [vmem:[#allocation6 + $0x1c] ss:$12 sps:$4 sm:$0xff]   ;;  %v52_v6 = vld [vmem:[#allocation3] sm:$0xff]  ;;  %v86_v32 = vlaneseq }
  0x23   :  { %190 = vmatprep.mubr.bf16.mxu0 %v1038_v1  ;;  %250 = vmatprep.mubr.bf16.mxu1 %v1038_v1  ;;  %v896_v3 = vld [vmem:[#allocation6 + $0x18] ss:$12 sps:$4 sm:$0xff]   ;;  %v899_v5 = vld [vmem:[#allocation6] ss:$12 sps:$4 sm:$0xff]   ;;  %vm133_vm0 = vcmask 261120   ;;  %v54_v14 = vld [vmem:[#allocation3 + $0x10] sm:$0xff] }
  0x24   :  { %892 = vset.pattern.permute.xlu1 %v1038_v1  ;;  %893 = vset.pattern.permute.xlu0 %v1038_v1  ;;  %v897_v4 = vld [vmem:[#allocation6 + $0x4] ss:$12 sps:$4 sm:$0xff]   ;;  %v53_v7 = vld [vmem:[#allocation3 + $0x8] sm:$0xff]  ;;  %v55_v15 = vld [vmem:[#allocation3 + $0x18] sm:$0xff]  ;;  %v1106_v33 = vshrl.u32 %v86_v32, 7  ;;  %vm694_vm1 = vcmask 130112  }
  0x25   :  { %170 = vmatprep.subr.bf16.mxu0 %v894_v2  ;;  %880 = vmatprep.subr.bf16.mxu1 %v894_v2  ;;  %v64_v8 = vld [vmem:[#allocation3 + $0x60] sm:$0xff]  ;;  %v65_v9 = vld [vmem:[#allocation3 + $0x68] sm:$0xff]  ;;  %v68_v11 = vpack.c.bf16 %v53_v7, %v52_v6  ;;  %v66_v16 = vld [vmem:[#allocation3 + $0x70] sm:$0xff]  ;;  %v69_v18 = vpack.c.bf16 %v55_v15, %v54_v14  ;;  %vm701_vm2 = vcmask 195712   ;;  %vm708_vm3 = vcmask 261312  }
  0x26   :  { %171 = vmatpush1.bf16.msra.mxu0 %v896_v3  ;;  %882 = vmatpush1.bf16.msra.mxu1 %v896_v3  ;;  %v900_v10 = vld [vmem:[#allocation6 + $0x20] ss:$12 sps:$4 sm:$0xff]   ;;  %v74_v12 = vpack.c.bf16 %v65_v9, %v64_v8  ;;  %v901_v13 = vld [vmem:[#allocation6 + $0x8] ss:$12 sps:$4 sm:$0xff]   ;;  %v67_v17 = vld [vmem:[#allocation3 + $0x78] sm:$0xff]  ;;  %v1113_v38 = vsub.s32 0, %v1106_v33 }
  0x27   :  { %172 = vmatprep.subr.bf16.mxu0 %v897_v4  ;;  %881 = vmatprep.subr.bf16.mxu1 %v897_v4  ;;  %v75_v19 = vpack.c.bf16 %v67_v17, %v66_v16  ;;  %v56_v20 = vld [vmem:[#allocation3 + $0x20] sm:$0xff]  ;;  %v57_v21 = vld [vmem:[#allocation3 + $0x28] sm:$0xff]  ;;  %v58_v23 = vld [vmem:[#allocation3 + $0x30] sm:$0xff]  ;;  %v92_v42 = vsub.s32 1, %v1106_v33  ;;  %v96_v54 = vsub.s32 2, %v1106_v33  ;;  %vm715_vm4 = vcmask 326912  }
  0x28   :  { %v70_v22 = vpack.c.bf16 %v57_v21, %v56_v20  ;;  %v59_v24 = vld [vmem:[#allocation3 + $0x38] sm:$0xff]  ;;  %v60_v25 = vld [vmem:[#allocation3 + $0x40] sm:$0xff]  ;;  %v61_v26 = vld [vmem:[#allocation3 + $0x48] sm:$0xff]  ;;  %vm722_vm5 = vcmask 392512   ;;  %vm729_vm6 = vcmask 458112   ;;  %vm736_vm7 = vcmask 523712  }
  0x29   :  { %v71_v27 = vpack.c.bf16 %v59_v24, %v58_v23  ;;  %v72_v28 = vpack.c.bf16 %v61_v26, %v60_v25  ;;  %v62_v29 = vld [vmem:[#allocation3 + $0x50] sm:$0xff]  ;;  %v63_v30 = vld [vmem:[#allocation3 + $0x58] sm:$0xff]  ;;  %vm743_vm8 = vcmask 589312   ;;  %vm750_vm9 = vcmask 654912  }
  0x2a   :  { %173 = vmatpush1.bf16.msra.mxu0 %v899_v5  ;;  %883 = vmatpush1.bf16.msra.mxu1 %v899_v5  ;;  %v73_v31 = vpack.c.bf16 %v63_v30, %v62_v29  ;;  %v84_v39 = vld [vmem:[%s1312_s2] sm:$0x7]  ;;  %vm757_vm10 = vcmask 720512   ;;  %vm764_vm11 = vcmask 786112   ;;  %vm771_vm12 = vcmask 851712  }
  0x2b   :  { %860 = vmatprep.subr.bf16.mxu1 %v900_v10  ;;  %v1124_v45 = vrot.slane %v84_v39, %v1113_v38  ;;  %v1128_v48 = vrot.slane %v84_v39, %v92_v42  ;;  %v416_v51 = vld [vmem:[%s1313_s3] sm:$0x7]  ;;  %v1152_v5 = vrot.slane %v84_v39, %v96_v54  ;;  %vm778_vm13 = vcmask 917312   ;;  %s1039_s3 = smov [#allocation8]  }
  0x2c   :  { %v1145_v62 = vrot.slane %v416_v51, %v1113_v38  ;;  %v1159_v20 = vrot.slane %v416_v51, %v96_v54  ;;  %vm785_vm14 = vcmask 982912   ;;  %s802_s10 = sshll.u32 %s1039_s3, 4  ;;  %vm792_vm15 = vcmask 1048512   ;;  %s803_s10 = int_to_ptr.vmem [resolvable:$true] %s802_s10 }
  0x2d   :  { %818 = vmatmul.mubr.msk.bf16.vlgmr.msra.gmra.mxu0 %vm133_vm0, %v68_v11  ;;  %824 = vmatmul.mubr.msk.bf16.vlgmr.msra.gmra.mxu1 %vm133_vm0, %v74_v12  ;;  %s1006_s11 = scalar_lea.vmem %s803_s10, 16  ;;  %s1010_s12 = scalar_lea.vmem %s803_s10, 32 }
  0x2e   :  { %861 = vmatpush3.bf16.msra.mxu1 %v900_v10  ;;  %200 = vmatprep.mubr.bf16.mxu0 %v1038_v1  ;;  %p1007_p10 = scmp.ne.s32.totalorder %s803_s10, %s1006_s11  ;;  %p1011_p11 = scmp.lt.s32.totalorder %s803_s10, %s803_s10 }
  0x2f   :  { %260 = vmatprep.mubr.bf16.mxu1 %v1038_v1  ;;  %862 = vmatprep.subr.bf16.mxu1 %v901_v13  ;;  %p1012_p12 = scmp.lt.s32.totalorder %s1010_s12, %s1006_s11 }
  0x31   :  { %p1013_p13 = por %p1012_p12, %p1011_p11 }
  0x32   :  { %863 = vmatpush3.bf16.msra.mxu1 %v901_v13 }
  0x33   :  { %p1014_p0 = pnand %p1013_p13, %p1007_p10 }
  0x35   :  { %819 = vmatmul.mubr.msk.bf16.gmra.mxu0 %vm133_vm0, %v69_v18  ;;  %825 = vmatmul.mubr.msk.bf16.gmra.mxu1 %vm133_vm0, %v75_v19 }
  0x36   :  { %210 = vmatprep.mubr.bf16.mxu0 %v1038_v1  ;;  %864 = vmatprep.mubr.msk.bf16.mxu1 %vm133_vm0, %v68_v11 }
  0x3d   :  { %820 = vmatmul.mubr.msk.bf16.gmra.mxu0 %vm133_vm0, %v70_v22  ;;  %865 = vmatmul.mubr.msk.bf16.vlgmr.msra.gmra.mxu1 %vm133_vm0, %v69_v18 }
  0x3e   :  { %220 = vmatprep.mubr.bf16.mxu0 %v1038_v1  ;;  %868 = vmatprep.mubr.msk.bf16.mxu1 %vm133_vm0, %v70_v22 }
  0x45   :  { %821 = vmatmul.mubr.msk.bf16.gmra.mxu0 %vm133_vm0, %v71_v27  ;;  %869 = vmatmul.mubr.msk.bf16.gmra.mxu1 %vm133_vm0, %v71_v27 }
  0x46   :  { %872 = vmatprep.mubr.msk.bf16.mxu1 %vm133_vm0, %v72_v28  ;;  %230 = vmatprep.mubr.bf16.mxu0 %v1038_v1 }
  0x4d   :  { %873 = vmatmul.mubr.msk.bf16.gmra.mxu1 %vm133_vm0, %v73_v31  ;;  %822 = vmatmul.mubr.msk.bf16.gmra.mxu0 %vm133_vm0, %v72_v28 }
  0x4e   :  { %876 = vmatprep.mubr.msk.bf16.mxu1 %vm133_vm0, %v74_v12  ;;  %240 = vmatprep.mubr.bf16.mxu0 %v1038_v1  ;;  %v1148_v1 = vrot.slane %v416_v51, %v92_v42 }
  0x55   :  { %877 = vmatmul.mubr.msk.bf16.gmra.mxu1 %vm133_vm0, %v75_v19  ;;  %823 = vmatmul.mubr.msk.bf16.gmra.mxu0 %vm133_vm0, %v73_v31 }
  0xed   :  { %v192_v34 = vpop.f32.mrf.mxu0  ;;  %v1108_v35 = vpop.f32.mrf.mxu1 }
  0xee   :  { %v193_v50 = vadd.f32 %v192_v34, %v1124_v45 }
  0xef   :  { %v194_v36 = vpop.f32.mrf.mxu0  ;;  %v1110_v37 = vpop.f32.mrf.mxu1 }
  0xf0   :  { %v195_v55 = vadd.f32 %v194_v36, %v1128_v48  ;;  %v368_v0 = vmax.f32 %v193_v50, 0.0 }
  0xf1   :  { %v196_v40 = vpop.f32.mrf.mxu0  ;;  %v1118_v41 = vpop.f32.mrf.mxu1 }
  0xf2   :  { %v197_v56 = vadd.f32 %v196_v40, %v1124_v45  ;;  %v369_v6 = vmax.f32 %v195_v55, 0.0  ;;  %v433_v16 = vmul.f32 %v1145_v62, %v368_v0 }
  0xf3   :  { %v198_v43 = vpop.f32.mrf.mxu0  ;;  %v1121_v44 = vpop.f32.mrf.mxu1 }
  0xf4   :  { %v199_v57 = vadd.f32 %v198_v43, %v1128_v48  ;;  %v371_v8 = vmax.f32 %v197_v56, 0.0  ;;  %v434_v21 = vmul.f32 %v1148_v1, %v369_v6 }
  0xf5   :  { %v202_v46 = vpop.f32.mrf.mxu0  ;;  %v1126_v47 = vpop.f32.mrf.mxu1 }
  0xf6   :  { %v203_v49 = vadd.f32 %v202_v46, %v1124_v45  ;;  %v372_v9 = vmax.f32 %v199_v57, 0.0  ;;  %v436_v25 = vmul.f32 %v1145_v62, %v371_v8 }
  0xf7   :  { %v204_v52 = vpop.f32.mrf.mxu0  ;;  %v1135_v53 = vpop.f32.mrf.mxu1 }
  0xf8   :  { %v374_v58 = vmax.f32 %v203_v49, 0.0  ;;  %v205_v59 = vadd.f32 %v204_v52, %v1128_v48  ;;  %v437_v26 = vmul.f32 %v1148_v1, %v372_v9  ;;  %v481_v52 = vadd.f32 %v434_v21, %v433_v16 }
  0xf9   :  { %v206_v60 = vpop.f32.mrf.mxu0  ;;  %v1142_v61 = vpop.f32.mrf.mxu1 }
  0xfa   :  { %v207_v63 = vadd.f32 %v206_v60, %v1124_v45  ;;  %v375_v2 = vmax.f32 %v205_v59, 0.0  ;;  %v439_v10 = vmul.f32 %v1145_v62, %v374_v58 }
  0xfb   :  { %v208_v3 = vpop.f32.mrf.mxu0  ;;  %v1150_v4 = vpop.f32.mrf.mxu1 }
  0xfc   :  { %v209_v7 = vadd.f32 %v208_v3, %v1128_v48  ;;  %v440_v11 = vmul.f32 %v1148_v1, %v375_v2  ;;  %v377_v14 = vmax.f32 %v207_v63, 0.0  ;;  %v485_v2 = vadd.f32 %v437_v26, %v436_v25 }
  0xfd   :  { %v212_v12 = vpop.f32.mrf.mxu0  ;;  %v866_v13 = vpop.f32.mrf.mxu1 }
  0xfe   :  { %v378_v15 = vmax.f32 %v209_v7, 0.0  ;;  %v314_v17 = vadd.f32 %v866_v13, %v1152_v5  ;;  %v213_v22 = vadd.f32 %v212_v12, %v1124_v45  ;;  %v489_v30 = vadd.f32 %v440_v11, %v439_v10 }
  0xff   :  { %v214_v18 = vpop.f32.mrf.mxu0  ;;  %v305_v19 = vpop.f32.mrf.mxu1  ;;  %v442_v31 = vmul.f32 %v1145_v62, %v377_v14 }
 0x100   :  { %v215_v23 = vadd.f32 %v214_v18, %v1128_v48  ;;  %v306_v24 = vadd.f32 %v305_v19, %v1152_v5  ;;  %v376_v27 = vmax.f32 %v314_v17, 0.0  ;;  %v443_v34 = vmul.f32 %v1148_v1, %v378_v15 }
 0x101   :  { %v216_v28 = vpop.f32.mrf.mxu0  ;;  %v867_v29 = vpop.f32.mrf.mxu1  ;;  %v380_v49 = vmax.f32 %v213_v22, 0.0 }
 0x102   :  { %v370_v36 = vmax.f32 %v306_v24, 0.0  ;;  %v317_v39 = vadd.f32 %v867_v29, %v1152_v5  ;;  %v217_v40 = vadd.f32 %v216_v28, %v1124_v45  ;;  %v441_v46 = vmul.f32 %v1159_v20, %v376_v27 }
 0x103   :  { %v218_v42 = vpop.f32.mrf.mxu0  ;;  %v308_v43 = vpop.f32.mrf.mxu1  ;;  %v381_v50 = vmax.f32 %v215_v23, 0.0  ;;  %v493_v0 = vadd.f32 %v443_v34, %v442_v31  ;;  %v445_v11 = vmul.f32 %v1145_v62, %v380_v49 }
 0x104   :  { %v379_v51 = vmax.f32 %v317_v39, 0.0  ;;  %v219_v54 = vadd.f32 %v218_v42, %v1128_v48  ;;  %v309_v55 = vadd.f32 %v308_v43, %v1152_v5  ;;  %v490_v58 = vadd.f32 %v489_v30, %v441_v46 }
 0x105   :  { %v222_v56 = vpop.f32.mrf.mxu0  ;;  %v870_v57 = vpop.f32.mrf.mxu1  ;;  %v435_v59 = vmul.f32 %v1159_v20, %v370_v36  ;;  %v383_v3 = vmax.f32 %v217_v40, 0.0  ;;  %v446_v15 = vmul.f32 %v1148_v1, %v381_v50 }
 0x106   :  { %v444_v60 = vmul.f32 %v1159_v20, %v379_v51  ;;  %v223_v63 = vadd.f32 %v222_v56, %v1124_v45  ;;  %v373_v6 = vmax.f32 %v309_v55, 0.0  ;;  %v330_v7 = vadd.f32 %v870_v57, %v1152_v5  ;;  %491 = vadd.xlane.f32.xlu1 %v490_v58 }
 0x107   :  { %v224_v8 = vpop.f32.mrf.mxu0  ;;  %v321_v9 = vpop.f32.mrf.mxu1  ;;  %v482_v10 = vadd.f32 %v481_v52, %v435_v59  ;;  %v384_v16 = vmax.f32 %v219_v54, 0.0  ;;  %v448_v25 = vmul.f32 %v1145_v62, %v383_v3  ;;  %v497_v50 = vadd.f32 %v446_v15, %v445_v11 }
 0x108   :  { %v386_v12 = vmax.f32 %v223_v63, 0.0  ;;  %v225_v13 = vadd.f32 %v224_v8, %v1128_v48  ;;  %v322_v14 = vadd.f32 %v321_v9, %v1152_v5  ;;  %v438_v17 = vmul.f32 %v1159_v20, %v373_v6 }
 0x109   :  { %483 = vadd.xlane.f32.xlu0 %v482_v10  ;;  %v226_v18 = vpop.f32.mrf.mxu0  ;;  %v871_v19 = vpop.f32.mrf.mxu1  ;;  %v494_v21 = vadd.f32 %v493_v0, %v444_v60  ;;  %v388_v27 = vmax.f32 %v330_v7, 0.0  ;;  %v449_v40 = vmul.f32 %v1148_v1, %v384_v16 }
 0x10a   :  { %v387_v22 = vmax.f32 %v225_v13, 0.0  ;;  %v382_v23 = vmax.f32 %v322_v14, 0.0  ;;  %v227_v24 = vadd.f32 %v226_v18, %v1124_v45  ;;  %v451_v26 = vmul.f32 %v1145_v62, %v386_v12 }
 0x10b   :  { %495 = vadd.xlane.f32.xlu1 %v494_v21  ;;  %v228_v28 = vpop.f32.mrf.mxu0  ;;  %v324_v29 = vpop.f32.mrf.mxu1  ;;  %v486_v30 = vadd.f32 %v485_v2, %v438_v17  ;;  %v333_v42 = vadd.f32 %v871_v19, %v1152_v5  ;;  %v453_v60 = vmul.f32 %v1159_v20, %v388_v27  ;;  %v501_v10 = vadd.f32 %v449_v40, %v448_v25 }
 0x10c   :  { %v452_v31 = vmul.f32 %v1148_v1, %v387_v22  ;;  %v447_v34 = vmul.f32 %v1159_v20, %v382_v23  ;;  %v389_v36 = vmax.f32 %v227_v24, 0.0  ;;  %v229_v39 = vadd.f32 %v228_v28, %v1128_v48 }
 0x10d   :  { %v325_v43 = vadd.f32 %v324_v29, %v1152_v5  ;;  %487 = vadd.xlane.f32.xlu0 %v486_v30  ;;  %v874_v46 = vpop.f32.mrf.mxu1  ;;  %v232_v49 = vpop.f32.mrf.mxu0  ;;  %v391_v3 = vmax.f32 %v333_v42, 0.0 }
 0x10e   :  { %v390_v51 = vmax.f32 %v229_v39, 0.0  ;;  %v233_v52 = vadd.f32 %v232_v49, %v1124_v45  ;;  %v454_v54 = vmul.f32 %v1145_v62, %v389_v36  ;;  %v498_v57 = vadd.f32 %v497_v50, %v447_v34 }
 0x10f   :  { %v385_v55 = vmax.f32 %v325_v43, 0.0  ;;  %v337_v56 = vpop.f32.mrf.mxu1  ;;  %v234_v58 = vpop.f32.mrf.mxu0  ;;  %v505_v59 = vadd.f32 %v452_v31, %v451_v26  ;;  %v346_v22 = vadd.f32 %v874_v46, %v1152_v5  ;;  %v456_v26 = vmul.f32 %v1159_v20, %v391_v3 }
 0x110   :  { %v455_v63 = vmul.f32 %v1148_v1, %v390_v51  ;;  %v392_v0 = vmax.f32 %v233_v52, 0.0  ;;  %v338_v2 = vadd.f32 %v337_v56, %v1152_v5  ;;  %v235_v7 = vadd.f32 %v234_v58, %v1128_v48 }
 0x111   :  { %v450_v6 = vmul.f32 %v1159_v20, %v385_v55  ;;  %499 = vadd.xlane.f32.xlu0 %v498_v57  ;;  %v875_v8 = vpop.f32.mrf.mxu1  ;;  %v236_v9 = vpop.f32.mrf.mxu0  ;;  %v506_v14 = vadd.f32 %v505_v59, %v453_v60  ;;  %v255_v51 = vadd.f32 %v1110_v37, %v1128_v48  ;;  %v400_v52 = vmax.f32 %v346_v22, 0.0 }
 0x112   :  { %v457_v11 = vmul.f32 %v1145_v62, %v392_v0  ;;  %v394_v12 = vmax.f32 %v338_v2, 0.0  ;;  %v349_v13 = vadd.f32 %v875_v8, %v1152_v5  ;;  %v393_v15 = vmax.f32 %v235_v7, 0.0 }
 0x113   :  { %v237_v16 = vadd.f32 %v236_v9, %v1124_v45  ;;  %v340_v17 = vpop.f32.mrf.mxu1  ;;  %v502_v18 = vadd.f32 %v501_v10, %v450_v6  ;;  %v238_v19 = vpop.f32.mrf.mxu0  ;;  %v509_v21 = vadd.f32 %v455_v63, %v454_v54  ;;  %v253_v63 = vadd.f32 %v1108_v35, %v1124_v45 }
 0x114   :  { %v403_v23 = vmax.f32 %v349_v13, 0.0  ;;  %v341_v24 = vadd.f32 %v340_v17, %v1152_v5  ;;  %v239_v25 = vadd.f32 %v238_v19, %v1128_v48  ;;  %v459_v27 = vmul.f32 %v1159_v20, %v394_v12 }
 0x115   :  { %v458_v28 = vmul.f32 %v1148_v1, %v393_v15  ;;  %v395_v29 = vmax.f32 %v237_v16, 0.0  ;;  %503 = vadd.xlane.f32.xlu1 %v502_v18  ;;  %507 = vadd.xlane.f32.xlu0 %v506_v14  ;;  %v878_v30 = vpop.f32.mrf.mxu1  ;;  %v242_v31 = vpop.f32.mrf.mxu0  ;;  %v510_v46 = vadd.f32 %v509_v21, %v456_v26  ;;  %v405_v8 = vmax.f32 %v255_v51, 0.0 }
 0x116   :  { %v468_v34 = vmul.f32 %v1159_v20, %v403_v23  ;;  %v397_v36 = vmax.f32 %v341_v24, 0.0  ;;  %v396_v39 = vmax.f32 %v239_v25, 0.0  ;;  %v243_v42 = vadd.f32 %v242_v31, %v1124_v45 }
 0x117   :  { %v460_v40 = vmul.f32 %v1145_v62, %v395_v29  ;;  %v353_v43 = vpop.f32.mrf.mxu1  ;;  %v244_v49 = vpop.f32.mrf.mxu0  ;;  %v513_v50 = vadd.f32 %v458_v28, %v457_v11  ;;  %v259_v9 = vadd.f32 %v1121_v44, %v1128_v48  ;;  %v465_v10 = vmul.f32 %v1159_v20, %v400_v52 }
 0x118   :  { %v461_v54 = vmul.f32 %v1148_v1, %v396_v39  ;;  %v462_v55 = vmul.f32 %v1159_v20, %v397_v36  ;;  %v398_v56 = vmax.f32 %v243_v42, 0.0  ;;  %v245_v57 = vadd.f32 %v244_v49, %v1128_v48  ;;  %v545_v39 = vld [vmem:[#allocation2] sm:$0x1] }
 0x119   :  { %511 = vadd.xlane.f32.xlu0 %v510_v46  ;;  %v879_v58 = vpop.f32.mrf.mxu1  ;;  %v514_v59 = vadd.f32 %v513_v50, %v459_v27  ;;  %v246_v60 = vpop.f32.mrf.mxu0  ;;  %v354_v0 = vadd.f32 %v353_v43, %v1152_v5  ;;  %v404_v15 = vmax.f32 %v253_v63, 0.0  ;;  %v257_v16 = vadd.f32 %v1118_v41, %v1124_v45 }
 0x11a   :  { %v517_v2 = vadd.f32 %v461_v54, %v460_v40  ;;  %v463_v37 = vmul.f32 %v1145_v62, %v398_v56  ;;  %v399_v3 = vmax.f32 %v245_v57, 0.0  ;;  %v247_v6 = vadd.f32 %v246_v60, %v1124_v45 }
 0x11b   :  { %v248_v7 = vpop.f32.mrf.mxu0  ;;  %v356_v11 = vpop.f32.mrf.mxu1  ;;  %v406_v17 = vmax.f32 %v354_v0, 0.0  ;;  %v470_v22 = vmul.f32 %v1148_v1, %v405_v8  ;;  %v408_v23 = vmax.f32 %v259_v9, 0.0  ;;  %v265_v24 = vadd.f32 %v1135_v53, %v1128_v48 }
 0x11c   :  { %v464_v12 = vmul.f32 %v1148_v1, %v399_v3  ;;  %v518_v35 = vadd.f32 %v517_v2, %v462_v55  ;;  %v401_v13 = vmax.f32 %v247_v6, 0.0  ;;  %v249_v14 = vadd.f32 %v248_v7, %v1128_v48 }
 0x11d   :  { %515 = vadd.xlane.f32.xlu0 %v514_v59  ;;  %v357_v18 = vadd.f32 %v356_v11, %v1152_v5  ;;  %v469_v27 = vmul.f32 %v1145_v62, %v404_v15  ;;  %v407_v41 = vmax.f32 %v257_v16, 0.0  ;;  %v263_v28 = vadd.f32 %v1126_v47, %v1124_v45 }
 0x11e   :  { %v521_v19 = vadd.f32 %v464_v12, %v463_v37  ;;  %v466_v44 = vmul.f32 %v1145_v62, %v401_v13  ;;  %v402_v21 = vmax.f32 %v249_v14, 0.0  ;;  %v362_v29 = vadd.f32 %v878_v30, %v1152_v5 }
 0x11f   :  { %v471_v31 = vmul.f32 %v1159_v20, %v406_v17  ;;  %v409_v36 = vmax.f32 %v357_v18, 0.0  ;;  %v529_v42 = vadd.f32 %v470_v22, %v469_v27  ;;  %v473_v53 = vmul.f32 %v1148_v1, %v408_v23 }
 0x120   :  { %v522_v25 = vadd.f32 %v521_v19, %v465_v10  ;;  %v467_v26 = vmul.f32 %v1148_v1, %v402_v21  ;;  %v411_v43 = vmax.f32 %v265_v24, 0.0  ;;  %v269_v46 = vadd.f32 %v1150_v4, %v1128_v48 }
 0x121   :  { %519 = vadd.xlane.f32.xlu0 %v518_v35  ;;  %v472_v50 = vmul.f32 %v1145_v62, %v407_v41  ;;  %v410_v51 = vmax.f32 %v263_v28, 0.0  ;;  %v267_v47 = vadd.f32 %v1142_v61, %v1124_v45  ;;  %v412_v30 = vmax.f32 %v362_v29, 0.0 }
 0x122   :  { %v525_v40 = vadd.f32 %v467_v26, %v466_v44  ;;  %v365_v52 = vadd.f32 %v879_v58, %v1152_v5  ;;  %v474_v54 = vmul.f32 %v1159_v20, %v409_v36  ;;  %v530_v55 = vadd.f32 %v529_v42, %v471_v31 }
 0x123   :  { %v476_v56 = vmul.f32 %v1148_v1, %v411_v43  ;;  %v414_v57 = vmax.f32 %v269_v46, 0.0  ;;  %v533_v48 = vadd.f32 %v473_v53, %v472_v50  ;;  %v475_v4 = vmul.f32 %v1145_v62, %v410_v51 }
 0x124   :  { %v526_v49 = vadd.f32 %v525_v40, %v468_v34  ;;  %v413_v34 = vmax.f32 %v267_v47, 0.0  ;;  %v477_v59 = vmul.f32 %v1159_v20, %v412_v30  ;;  %v415_v60 = vmax.f32 %v365_v52, 0.0 }
 0x125   :  { %523 = vadd.xlane.f32.xlu0 %v522_v25  ;;  %v534_v63 = vadd.f32 %v533_v48, %v474_v54  ;;  %v479_v45 = vmul.f32 %v1148_v1, %v414_v57  ;;  %v537_v61 = vadd.f32 %v476_v56, %v475_v4  ;;  %v1270_v48 = vand.u32 127, %v86_v32 }
 0x126   :  { %548 = vperm.xlu1 %892, %v545_v39   ;;  %v478_v5 = vmul.f32 %v1145_v62, %v413_v34  ;;  %v480_v58 = vmul.f32 %v1159_v20, %v415_v60 }
 0x127   :  { %v538_v0 = vadd.f32 %v537_v61, %v477_v59 }
 0x128   :  { %v541_v2 = vadd.f32 %v479_v45, %v478_v5 }
 0x129   :  { %531 = vadd.xlane.f32.xlu0 %v530_v55 }
 0x12a   :  { %v542_v37 = vadd.f32 %v541_v2, %v480_v58  ;;  %v689_v58 = vadd.s32 4294967288, %v1270_v48 }
 0x12d   :  { %535 = vadd.xlane.f32.xlu0 %v534_v63 }
 0x131   :  { %539 = vadd.xlane.f32.xlu0 %v538_v0 }
 0x135   :  { %543 = vadd.xlane.f32.xlu0 %v542_v37 }
 0x14a   :  { %527 = vadd.xlane.f32.xlu1 %v526_v49 }
 0x18f   :  { %v492_v6 = vpop.xlane.xlu1 %491 }
 0x192   :  { %v484_v3 = vpop.xlane.xlu0 %483 }
 0x194   :  { %v496_v8 = vpop.xlane.xlu1 %495 }
 0x196   :  { %v488_v7 = vpop.xlane.xlu0 %487 }
 0x19a   :  { %v500_v9 = vpop.xlane.xlu0 %499 }
 0x19e   :  { %v504_v10 = vpop.xlane.xlu1 %503  ;;  %v508_v11 = vpop.xlane.xlu0 %507 }
 0x1a2   :  { %v512_v1 = vpop.xlane.xlu0 %511  ;;  %v549_v12 = vpop.permute.xlu1 %548 }
 0x1a3   :  { %v1254_v62 = vrot.slane %v549_v12, %v1113_v38 }
 0x1a5   :  { %v555_v20 = vadd.f32 %v1254_v62, %v484_v3  ;;  %v556_v14 = vadd.f32 %v1254_v62, %v488_v7  ;;  %v557_v15 = vadd.f32 %v1254_v62, %v492_v6  ;;  %v558_v44 = vadd.f32 %v1254_v62, %v496_v8 }
 0x1a6   :  { %v516_v35 = vpop.xlane.xlu0 %515  ;;  %v559_v21 = vadd.f32 %v1254_v62, %v500_v9  ;;  %v560_v23 = vadd.f32 %v1254_v62, %v504_v10  ;;  %v561_v25 = vadd.f32 %v1254_v62, %v508_v11  ;;  %v562_v26 = vadd.f32 %v1254_v62, %v512_v1 }
 0x1a7   :  { %v834_v16 = vmul.f32 -1.442695, %v555_v20  ;;  %v835_v17 = vmul.f32 -1.442695, %v556_v14  ;;  %v836_v19 = vmul.f32 -1.442695, %v557_v15  ;;  %v563_v39 = vadd.f32 %v1254_v62, %v516_v35 }
 0x1a8   :  { %v837_v22 = vmul.f32 -1.442695, %v558_v44  ;;  %v838_v24 = vmul.f32 -1.442695, %v559_v21  ;;  %v839_v41 = vmul.f32 -1.442695, %v560_v23  ;;  %v687_v9 = vsub.s32 %v1270_v48, %v1106_v33 }
 0x1a9   :  { %902 = vpow2.f32 %v834_v16  ;;  %v840_v31 = vmul.f32 -1.442695, %v561_v25  ;;  %v841_v36 = vmul.f32 -1.442695, %v562_v26  ;;  %v842_v46 = vmul.f32 -1.442695, %v563_v39 }
 0x1aa   :  { %v520_v13 = vpop.xlane.xlu0 %519  ;;  %904 = vpow2.f32 %v835_v17  ;;  %v696_v6 = vadd.s32 4294967280, %v1270_v48  ;;  %v692_v10 = vsub.s32 %v689_v58, %v1106_v33  ;;  %v710_v17 = vadd.s32 4294967264, %v1270_v48 }
 0x1ab   :  { %906 = vpow2.f32 %v836_v19  ;;  %v564_v49 = vadd.f32 %v1254_v62, %v520_v13  ;;  %v703_v13 = vadd.s32 4294967272, %v1270_v48 }
 0x1ac   :  { %908 = vpow2.f32 %v837_v22  ;;  %v699_v20 = vsub.s32 %v696_v6, %v1106_v33 }
 0x1ad   :  { %910 = vpow2.f32 %v838_v24  ;;  %v843_v52 = vmul.f32 -1.442695, %v564_v49  ;;  %v706_v22 = vsub.s32 %v703_v13, %v1106_v33  ;;  %v717_v24 = vadd.s32 4294967256, %v1270_v48 }
 0x1ae   :  { %v524_v18 = vpop.xlane.xlu0 %523  ;;  %912 = vpow2.f32 %v839_v41 }
 0x1af   :  { %914 = vpow2.f32 %v840_v31  ;;  %v565_v50 = vadd.f32 %v1254_v62, %v524_v18 }
 0x1b0   :  { %916 = vpow2.f32 %v841_v36 }
 0x1b1   :  { %v844_v56 = vmul.f32 -1.442695, %v565_v50 }
 0x1b2   :  { %v532_v38 = vpop.xlane.xlu0 %531 }
 0x1b3   :  { %v567_v30 = vadd.f32 %v1254_v62, %v532_v38 }
 0x1b5   :  { %v846_v59 = vmul.f32 -1.442695, %v567_v30 }
 0x1b6   :  { %v536_v27 = vpop.xlane.xlu0 %535  ;;  %v903_v28 = vpop.eup %902 }
 0x1b7   :  { %v905_v29 = vpop.eup %904  ;;  %v619_v40 = vadd.f32 1.0, %v903_v28  ;;  %v568_v54 = vadd.f32 %v1254_v62, %v536_v27  ;;  %v713_v27 = vsub.s32 %v710_v17, %v1106_v33 }
 0x1b8   :  { %v907_v42 = vpop.eup %906  ;;  %v620_v43 = vadd.f32 1.0, %v905_v29 }
 0x1b9   :  { %v621_v51 = vadd.f32 1.0, %v907_v42  ;;  %918 = vrcp.f32 %v619_v40  ;;  %v909_v47 = vpop.eup %908  ;;  %v847_v63 = vmul.f32 -1.442695, %v568_v54  ;;  %v720_v40 = vsub.s32 %v717_v24, %v1106_v33 }
 0x1ba   :  { %v540_v53 = vpop.xlane.xlu0 %539  ;;  %920 = vrcp.f32 %v620_v43  ;;  %v911_v57 = vpop.eup %910  ;;  %v622_v34 = vadd.f32 1.0, %v909_v47  ;;  %v724_v42 = vadd.s32 4294967248, %v1270_v48  ;;  %v731_v47 = vadd.s32 4294967240, %v1270_v48 }
 0x1bb   :  { %922 = vpow2.f32 %v842_v46  ;;  %v569_v4 = vadd.f32 %v1254_v62, %v540_v53  ;;  %v913_v45 = vpop.eup %912  ;;  %v623_v61 = vadd.f32 1.0, %v911_v57 }
 0x1bc   :  { %924 = vrcp.f32 %v621_v51  ;;  %v915_v2 = vpop.eup %914  ;;  %v624_v32 = vadd.f32 1.0, %v913_v45 }
 0x1bd   :  { %926 = vpow2.f32 %v843_v52  ;;  %v848_v5 = vmul.f32 -1.442695, %v569_v4  ;;  %v917_v37 = vpop.eup %916  ;;  %v625_v1 = vadd.f32 1.0, %v915_v2  ;;  %v752_v2 = vadd.s32 4294967216, %v1270_v48 }
 0x1be   :  { %v544_v55 = vpop.xlane.xlu0 %543  ;;  %928 = vpow2.f32 %v844_v56  ;;  %v626_v15 = vadd.f32 1.0, %v917_v37 }
 0x1bf   :  { %v570_v60 = vadd.f32 %v1254_v62, %v544_v55  ;;  %930 = vrcp.f32 %v622_v34  ;;  %v727_v55 = vsub.s32 %v724_v42, %v1106_v33 }
 0x1c0   :  { %932 = vpow2.f32 %v846_v59  ;;  %v738_v59 = vadd.s32 4294967232, %v1270_v48 }
 0x1c1   :  { %v849_v0 = vmul.f32 -1.442695, %v570_v60  ;;  %934 = vpow2.f32 %v847_v63  ;;  %v734_v60 = vsub.s32 %v731_v47, %v1106_v33 }
 0x1c2   :  { %936 = vrcp.f32 %v623_v61  ;;  %v741_v58 = vsub.s32 %v738_v59, %v1106_v33 }
 0x1c3   :  { %938 = vpow2.f32 %v848_v5  ;;  %v745_v5 = vadd.s32 4294967224, %v1270_v48 }
 0x1c4   :  { %940 = vpow2.f32 %v849_v0 }
 0x1c5   :  { %942 = vrcp.f32 %v624_v32 }
 0x1c6   :  { %v919_v7 = vpop.eup %918 }
 0x1c7   :  { %v921_v11 = vpop.eup %920  ;;  %v688_v16 = vrot.slane %v919_v7, %v687_v9  ;;  %v759_v7 = vadd.s32 4294967208, %v1270_v48 }
 0x1c8   :  { %v923_v35 = vpop.eup %922 }
 0x1c9   :  { %v925_v14 = vpop.eup %924  ;;  %v627_v19 = vadd.f32 1.0, %v923_v35 }
 0x1ca   :  { %v927_v18 = vpop.eup %926  ;;  %v700_v44 = vrot.slane %v925_v14, %v699_v20  ;;  %v780_v20 = vadd.s32 4294967184, %v1270_v48  ;;  %v762_v14 = vsub.s32 %v759_v7, %v1106_v33 }
 0x1cb   :  { %v929_v21 = vpop.eup %928  ;;  %v628_v26 = vadd.f32 1.0, %v927_v18 }
 0x1cc   :  { %v931_v23 = vpop.eup %930  ;;  %v629_v28 = vadd.f32 1.0, %v929_v21 }
 0x1cd   :  { %v933_v25 = vpop.eup %932  ;;  %v707_v36 = vrot.slane %v931_v23, %v706_v22 }
 0x1ce   :  { %v935_v41 = vpop.eup %934  ;;  %v631_v43 = vadd.f32 1.0, %v933_v25 }
 0x1cf   :  { %v937_v31 = vpop.eup %936  ;;  %v632_v50 = vadd.f32 1.0, %v935_v41 }
 0x1d0   :  { %v939_v39 = vpop.eup %938  ;;  %v714_v51 = vrot.slane %v937_v31, %v713_v27 }
 0x1d1   :  { %v941_v53 = vpop.eup %940  ;;  %v633_v52 = vadd.f32 1.0, %v939_v39 }
 0x1d2   :  { %v943_v49 = vpop.eup %942  ;;  %v634_v57 = vadd.f32 1.0, %v941_v53 }
 0x1d3   :  { %v528_v3 = vpop.xlane.xlu1 %527  ;;  %v721_v34 = vrot.slane %v943_v49, %v720_v40 }
 0x1d4   :  { %v566_v8 = vadd.f32 %v1254_v62, %v528_v3  ;;  %v693_v62 = vrot.slane %v921_v11, %v692_v10  ;;  %v748_v3 = vsub.s32 %v745_v5, %v1106_v33  ;;  %v755_v10 = vsub.s32 %v752_v2, %v1106_v33 }
 0x1d5   :  { %v766_v11 = vadd.s32 4294967200, %v1270_v48 }
 0x1d6   :  { %v845_v12 = vmul.f32 -1.442695, %v566_v8  ;;  %v695_v38 = vsel %vm694_vm1, %v693_v62, %v688_v16 }
 0x1d7   :  { %v702_v29 = vsel %vm701_vm2, %v700_v44, %v695_v38  ;;  %v769_v17 = vsub.s32 %v766_v11, %v1106_v33  ;;  %v783_v38 = vsub.s32 %v780_v20, %v1106_v33 }
 0x1d8   :  { %944 = vpow2.f32 %v845_v12  ;;  %v709_v46 = vsel %vm708_vm3, %v707_v36, %v702_v29  ;;  %v773_v12 = vadd.s32 4294967192, %v1270_v48 }
 0x1d9   :  { %946 = vrcp.f32 %v625_v1  ;;  %v716_v54 = vsel %vm715_vm4, %v714_v51, %v709_v46 }
 0x1da   :  { %948 = vrcp.f32 %v626_v15  ;;  %v723_v63 = vsel %vm722_vm5, %v721_v34, %v716_v54  ;;  %v787_v15 = vadd.s32 4294967176, %v1270_v48  ;;  %v776_v44 = vsub.s32 %v773_v12, %v1106_v33 }
 0x1db   :  { %950 = vrcp.f32 %v627_v19 }
 0x1dc   :  { %952 = vrcp.f32 %v628_v26  ;;  %v790_v24 = vsub.s32 %v787_v15, %v1106_v33 }
 0x1dd   :  { %954 = vrcp.f32 %v629_v28 }
 0x1de   :  { %956 = vrcp.f32 %v631_v43 }
 0x1df   :  { %958 = vrcp.f32 %v632_v50 }
 0x1e5   :  { %v945_v30 = vpop.eup %944 }
 0x1e6   :  { %v947_v56 = vpop.eup %946  ;;  %v630_v4 = vadd.f32 1.0, %v945_v30 }
 0x1e7   :  { %v949_v45 = vpop.eup %948  ;;  %v728_v61 = vrot.slane %v947_v56, %v727_v55 }
 0x1e8   :  { %960 = vrcp.f32 %v630_v4  ;;  %v951_v32 = vpop.eup %950  ;;  %v735_v37 = vrot.slane %v949_v45, %v734_v60 }
 0x1e9   :  { %962 = vrcp.f32 %v633_v52  ;;  %v730_v0 = vsel %vm729_vm6, %v728_v61, %v723_v63  ;;  %v953_v8 = vpop.eup %952  ;;  %v742_v9 = vrot.slane %v951_v32, %v741_v58 }
 0x1ea   :  { %964 = vrcp.f32 %v634_v57  ;;  %v737_v6 = vsel %vm736_vm7, %v735_v37, %v730_v0  ;;  %v955_v1 = vpop.eup %954  ;;  %v749_v13 = vrot.slane %v953_v8, %v748_v3 }
 0x1eb   :  { %v744_v35 = vsel %vm743_vm8, %v742_v9, %v737_v6  ;;  %v957_v16 = vpop.eup %956  ;;  %v756_v62 = vrot.slane %v955_v1, %v755_v10 }
 0x1ec   :  { %v959_v18 = vpop.eup %958  ;;  %v751_v19 = vsel %vm750_vm9, %v749_v13, %v744_v35  ;;  %v770_v26 = vrot.slane %v957_v16, %v769_v17 }
 0x1ed   :  { %v758_v48 = vsel %vm757_vm10, %v756_v62, %v751_v19  ;;  %v777_v41 = vrot.slane %v959_v18, %v776_v44 }
 0x1f5   :  { %v961_v21 = vpop.eup %960 }
 0x1f6   :  { %v963_v22 = vpop.eup %962  ;;  %v763_v23 = vrot.slane %v961_v21, %v762_v14 }
 0x1f7   :  { %v965_v25 = vpop.eup %964  ;;  %v784_v29 = vrot.slane %v963_v22, %v783_v38 }
 0x1f8   :  { %v765_v27 = vsel %vm764_vm11, %v763_v23, %v758_v48  ;;  %v791_v36 = vrot.slane %v965_v25, %v790_v24 }
 0x1f9   :  { %v772_v28 = vsel %vm771_vm12, %v770_v26, %v765_v27 }
 0x1fa   :  { %v779_v31 = vsel %vm778_vm13, %v777_v41, %v772_v28 }
 0x1fb   :  { %v786_v39 = vsel %vm785_vm14, %v784_v29, %v779_v31 }
 0x1fc   :  { %v793_v40 = vsel %vm792_vm15, %v791_v36, %v786_v39 }
 0x1fd   :  { %795 = vst [vmem:[#allocation8] sm:$0x1] %v793_v40 }
 0x1fe   :  { %1017 = shalt.err (!%p1014_p0)
}
 0x1ff   :  { %805 = dma.vmem_to_hbm [thread:$0]  %s803_s10, 16, %s1315_s5, [#allocation5]  }
 0x200   :  { %1030 = dma.done.wait [#allocation5], 16  }
 0x201   :  { %1031 = vsyncadd [#allocation5], 4294967280 }
 0x202   :  { %809 = vsyncpa [#allocation4], 1 }
 0x203   :  { %810 = vsyncpa [#allocation7], 1 }
 0x204   :  { %811 = vsyncpa [#allocation5], 1 }

</bundles_post_ra>
